<compile_context>
chip_gen: v6e
topology: v6e:2x2x1
jax: 0.10.0
libtpu: 0.0.40
codegen_flags: <defaults>
</compile_context>

<pallas_src>
import math
from functools import partial

import jax
import jax.numpy as jnp
from jax.experimental import pallas as pl
from jax.experimental.pallas import tpu as pltpu


def _round_up(v, m):
    return ((v + m - 1) // m) * m


def value_kernel(x_ref, w1_ref, b1_ref, w2_ref, b2_ref, w3_ref, b3_ref, o_ref,
                 *, act_dtype):
    """Fused 3-layer MLP.

    x is streamed in its native (TILE_B, num_inputs) layout; activations are carried
    transposed as (features, TILE_B) so the batch sits on the 128-lane axis.
    """
    x = x_ref[...].astype(w1_ref.dtype)          # (TILE_B, num_inputs); cheap VPU cast
    # Layer 1: contract dim 1 of both operands  ==  w1 @ x.T  -> (64, TILE_B).
    # No wrapper-side transpose of x is ever materialized in HBM.
    a1 = jax.lax.dot_general(
        w1_ref[...], x, (((1,), (1,)), ((), ())),
        preferred_element_type=jnp.float32) + b1_ref[...]          # f32 acc + f32 bias
    h1 = jnp.tanh(a1.astype(act_dtype))          # bf16 tanh on the v6e/v7x fast path
    a2 = jnp.dot(w2_ref[...], h1.astype(w2_ref.dtype),
                 preferred_element_type=jnp.float32) + b2_ref[...]
    h2 = jnp.tanh(a2.astype(act_dtype))
    v = jnp.dot(w3_ref[...], h2.astype(w3_ref.dtype),
                preferred_element_type=jnp.float32) + b3_ref[...]  # (1, TILE_B) lane-dense
    o_ref[...] = v.astype(o_ref.dtype)


def value_forward(x, params, *, tile_b=8192, use_bf16=False):
    """x: (B, num_inputs) f32. Returns squeezed state values, like the PyTorch module.

    use_bf16=True -> bf16 weights / MXU operands / tanh (f32 accumulation): the
    recommended fast path on v6e/v7x.  Keep False on v5e (no bf16 VPU/EUP) or when
    bit-faithful f32 numerics are required.
    """
    w1, b1, w2, b2, w3, b3 = params
    B, num_inputs = x.shape

    # Lane-dense batch tile: multiple of 128, capped at 16384 (v7x VMEM budget),
    # never larger than needed, and >=2 grid steps whenever B > 128 so the
    # "parallel" batch axis actually splits across v7x's two TensorCores.
    tb_req = max(128, (min(int(tile_b), 16384) // 128) * 128)
    two_step_cap = max(128, _round_up(-(-B // 2), 128))
    tb = min(tb_req, two_step_cap, _round_up(B, 128))
    n_tiles = pl.cdiv(B, tb)   # ragged last block: OOB reads only poison columns
                               # that are sliced off below (no cross-batch reduction)

    if use_bf16:
        # Weights are VMEM-resident, so this cast is a one-off negligible cost.
        # TODO(synk): for max HBM savings supply x already in bf16 from the producer;
        # casting x here would add an extra HBM pass, so it is streamed as-is and
        # cast to bf16 in-kernel (VPU) instead.
        w1, w2, w3 = (w.astype(jnp.bfloat16) for w in (w1, w2, w3))
    act_dtype = jnp.bfloat16 if use_bf16 else jnp.float32

    # Weights/biases: full-shape blocks with grid-independent index maps so they
    # stay VMEM-resident across all batch tiles (no per-step re-DMA).
    resident = lambda a: pl.BlockSpec(a.shape, lambda i: (0,) * a.ndim)

    out = pl.pallas_call(
        partial(value_kernel, act_dtype=act_dtype),
        # Output padded to whole tiles: every (1, tb) store stays unmasked; the few
        # tail columns are garbage and get sliced off below.
        out_shape=jax.ShapeDtypeStruct((1, n_tiles * tb), jnp.float32),
        grid=(n_tiles,),
        in_specs=[
            pl.BlockSpec((tb, num_inputs), lambda i: (i, 0)),   # streamed x, native layout
            resident(w1), resident(b1),
            resident(w2), resident(b2),
            resident(w3), resident(b3),
        ],
        out_specs=pl.BlockSpec((1, tb), lambda i: (0, i)),       # lane-dense output row
        compiler_params=pltpu.CompilerParams(
            dimension_semantics=("parallel",),                   # megacore sharding on v7x
            vmem_limit_bytes=32 * 1024 * 1024,                   # headroom over v5e default
        ),
    )(x, w1, b1, w2, b2, w3, b3)

    # Drop tail padding, then `.squeeze()` semantics from the PyTorch module.
    return jnp.squeeze(out[0, :B])


def init_value_params(key, num_inputs):
    """nn.Linear default init (U(-1/sqrt(fan_in), +1/sqrt(fan_in))) in PyTorch layout:
    weights (out_features, in_features), biases (out_features, 1).
    value_head weight scaled by 0.1, bias zeroed — as in Value.__init__."""
    k = jax.random.split(key, 6)

    def linear(kw, kb, fan_in, fan_out):
        bound = 1.0 / math.sqrt(fan_in)
        w = jax.random.uniform(kw, (fan_out, fan_in), jnp.float32, -bound, bound)
        b = jax.random.uniform(kb, (fan_out, 1), jnp.float32, -bound, bound)
        return w, b

    w1, b1 = linear(k[0], k[1], num_inputs, 64)
    w2, b2 = linear(k[2], k[3], 64, 64)
    w3, b3 = linear(k[4], k[5], 64, 1)
    w3 = w3 * 0.1                            # value_head.weight.data.mul_(0.1)
    b3 = jnp.zeros_like(b3)                  # value_head.bias.data.mul_(0.0)
    return (w1, b1, w2, b2, w3, b3)


def value_forward_ref(x, params):
    """Pure-JAX reference for correctness checking."""
    w1, b1, w2, b2, w3, b3 = params
    h1 = jnp.tanh(x @ w1.T + b1[:, 0])
    h2 = jnp.tanh(h1 @ w2.T + b2[:, 0])
    return jnp.squeeze(h2 @ w3.T + b3[:, 0])


if __name__ == "__main__":
    key = jax.random.PRNGKey(0)
    kx_small, kx_big, kp = jax.random.split(key, 3)

    num_inputs = 32
    params = init_value_params(kp, num_inputs)

    # Small case (toy usage of the original module): single grid step, partial block.
    x_small = jax.random.normal(kx_small, (8, num_inputs), dtype=jnp.float32)
    out_small = jax.block_until_ready(value_forward(x_small, params))
    ref_small = value_forward_ref(x_small, params)
    assert out_small.shape == (8,), f"unexpected output shape {out_small.shape}"
    assert jnp.allclose(out_small, ref_small, atol=1e-4, rtol=1e-4), "f32 mismatch (small)"

    # Non-multiple batch with the default tile policy: 2 grid steps, ragged last block.
    x_big = jax.random.normal(kx_big, (300, num_inputs), dtype=jnp.float32)
    out_big = jax.block_until_ready(value_forward(x_big, params))
    ref_big = value_forward_ref(x_big, params)
    assert out_big.shape == (300,), f"unexpected output shape {out_big.shape}"
    assert jnp.allclose(out_big, ref_big, atol=1e-4, rtol=1e-4), "f32 mismatch (big)"

    # Forced small tile: 3 grid steps (pipelined multi-tile path).
    out_tiled = jax.block_until_ready(value_forward(x_big, params, tile_b=128))
    assert out_tiled.shape == (300,)
    assert jnp.allclose(out_tiled, ref_big, atol=1e-4, rtol=1e-4), "f32 mismatch (tiled)"

    # bf16 fast path (v6e/v7x): bf16 MXU operands + bf16 tanh, f32 accumulation.
    out_bf16 = jax.block_until_ready(value_forward(x_big, params, use_bf16=True))
    assert out_bf16.shape == (300,)
    assert jnp.allclose(out_bf16, ref_big, atol=5e-2, rtol=5e-2), "bf16 mismatch"

    print("KERNEL_OK")
</pallas_src>

<mosaic_0001>
module attributes {stable_mosaic.version = 11 : i64} {
  func.func @value_kernel(%arg0: i32, %arg1: memref<128x32xf32, #tpu.memory_space<vmem>>, %arg2: memref<64x32xf32, #tpu.memory_space<vmem>>, %arg3: memref<64x1xf32, #tpu.memory_space<vmem>>, %arg4: memref<64x64xf32, #tpu.memory_space<vmem>>, %arg5: memref<64x1xf32, #tpu.memory_space<vmem>>, %arg6: memref<1x64xf32, #tpu.memory_space<vmem>>, %arg7: memref<1x1xf32, #tpu.memory_space<vmem>>, %arg8: memref<1x128xf32, #tpu.memory_space<vmem>>) attributes {dimension_semantics = [#tpu.dimension_semantics<parallel>], iteration_bounds = array<i64: 1>, scalar_prefetch = 0 : i64, scratch_operands = 0 : i64, tpu.core_type = #tpu.core_type<tc>, window_params = [{transform_indices = @transform_0, window_bounds = array<i64: 128, 32>}, {pipeline_mode = #tpu.pipeline_mode<synchronous>, transform_indices = @transform_1, window_bounds = array<i64: 64, 32>}, {pipeline_mode = #tpu.pipeline_mode<synchronous>, transform_indices = @transform_2, window_bounds = array<i64: 64, 1>}, {pipeline_mode = #tpu.pipeline_mode<synchronous>, transform_indices = @transform_3, window_bounds = array<i64: 64, 64>}, {pipeline_mode = #tpu.pipeline_mode<synchronous>, transform_indices = @transform_4, window_bounds = array<i64: 64, 1>}, {pipeline_mode = #tpu.pipeline_mode<synchronous>, transform_indices = @transform_5, window_bounds = array<i64: 1, 64>}, {pipeline_mode = #tpu.pipeline_mode<synchronous>, transform_indices = @transform_6, window_bounds = array<i64: 1, 1>}, {transform_indices = @transform_7, window_bounds = array<i64: 1, 128>}]} {
    %c0 = arith.constant 0 : index
    %c0_0 = arith.constant 0 : index
    %0 = vector.load %arg1[%c0, %c0_0] : memref<128x32xf32, #tpu.memory_space<vmem>>, vector<128x32xf32>
    %c0_1 = arith.constant 0 : index
    %c0_2 = arith.constant 0 : index
    %1 = vector.load %arg2[%c0_1, %c0_2] : memref<64x32xf32, #tpu.memory_space<vmem>>, vector<64x32xf32>
    %cst = arith.constant dense<0.000000e+00> : vector<64x128xf32>
    %2 = tpu.matmul %1, %0, %cst {dimension_numbers = #tpu.dot_dimension_numbers<[1], [1], [0], [0], [0, 0, 1, 0], [], []>} : vector<64x32xf32>, vector<128x32xf32>, vector<64x128xf32> -> vector<64x128xf32>
    %c0_3 = arith.constant 0 : index
    %c0_4 = arith.constant 0 : index
    %3 = vector.load %arg3[%c0_3, %c0_4] : memref<64x1xf32, #tpu.memory_space<vmem>>, vector<64x1xf32>
    %4 = vector.broadcast %3 : vector<64x1xf32> to vector<64x128xf32>
    %5 = arith.addf %2, %4 : vector<64x128xf32>
    %6 = math.tanh %5 : vector<64x128xf32>
    %c0_5 = arith.constant 0 : index
    %c0_6 = arith.constant 0 : index
    %7 = vector.load %arg4[%c0_5, %c0_6] : memref<64x64xf32, #tpu.memory_space<vmem>>, vector<64x64xf32>
    %cst_7 = arith.constant dense<0.000000e+00> : vector<64x128xf32>
    %8 = tpu.matmul %7, %6, %cst_7 {dimension_numbers = #tpu.dot_dimension_numbers<[1], [0], [0], [1], [0, 0, 1, 1], [], []>} : vector<64x64xf32>, vector<64x128xf32>, vector<64x128xf32> -> vector<64x128xf32>
    %c0_8 = arith.constant 0 : index
    %c0_9 = arith.constant 0 : index
    %9 = vector.load %arg5[%c0_8, %c0_9] : memref<64x1xf32, #tpu.memory_space<vmem>>, vector<64x1xf32>
    %10 = vector.broadcast %9 : vector<64x1xf32> to vector<64x128xf32>
    %11 = arith.addf %8, %10 : vector<64x128xf32>
    %12 = math.tanh %11 : vector<64x128xf32>
    %c0_10 = arith.constant 0 : index
    %c0_11 = arith.constant 0 : index
    %13 = vector.load %arg6[%c0_10, %c0_11] : memref<1x64xf32, #tpu.memory_space<vmem>>, vector<1x64xf32>
    %cst_12 = arith.constant dense<0.000000e+00> : vector<1x128xf32>
    %14 = tpu.matmul %13, %12, %cst_12 {dimension_numbers = #tpu.dot_dimension_numbers<[1], [0], [0], [1], [0, 0, 1, 1], [], []>} : vector<1x64xf32>, vector<64x128xf32>, vector<1x128xf32> -> vector<1x128xf32>
    %c0_13 = arith.constant 0 : index
    %c0_14 = arith.constant 0 : index
    %15 = vector.load %arg7[%c0_13, %c0_14] : memref<1x1xf32, #tpu.memory_space<vmem>>, vector<1x1xf32>
    %16 = vector.broadcast %15 : vector<1x1xf32> to vector<1x128xf32>
    %17 = arith.addf %14, %16 : vector<1x128xf32>
    %c0_15 = arith.constant 0 : index
    %c0_16 = arith.constant 0 : index
    %18 = vector.load %arg8[%c0_15, %c0_16] : memref<1x128xf32, #tpu.memory_space<vmem>>, vector<1x128xf32>
    tpu.vector_store %arg8[%c0_15, %c0_16], %17 {strides = array<i32>} : memref<1x128xf32, #tpu.memory_space<vmem>>, vector<1x128xf32>,
    return
  }
  func.func @transform_0(%arg0: i32) -> (i32, i32) {
    %c0_i32 = arith.constant 0 : i32
    %c0_i32_0 = arith.constant 0 : i32
    return %arg0, %c0_i32 : i32, i32
  }
  func.func @transform_1(%arg0: i32) -> (i32, i32) {
    %c0_i32 = arith.constant 0 : i32
    %c0_i32_0 = arith.constant 0 : i32
    %c0_i32_1 = arith.constant 0 : i32
    return %c0_i32, %c0_i32_0 : i32, i32
  }
  func.func @transform_2(%arg0: i32) -> (i32, i32) {
    %c0_i32 = arith.constant 0 : i32
    %c0_i32_0 = arith.constant 0 : i32
    %c0_i32_1 = arith.constant 0 : i32
    return %c0_i32, %c0_i32_0 : i32, i32
  }
  func.func @transform_3(%arg0: i32) -> (i32, i32) {
    %c0_i32 = arith.constant 0 : i32
    %c0_i32_0 = arith.constant 0 : i32
    %c0_i32_1 = arith.constant 0 : i32
    return %c0_i32, %c0_i32_0 : i32, i32
  }
  func.func @transform_4(%arg0: i32) -> (i32, i32) {
    %c0_i32 = arith.constant 0 : i32
    %c0_i32_0 = arith.constant 0 : i32
    %c0_i32_1 = arith.constant 0 : i32
    return %c0_i32, %c0_i32_0 : i32, i32
  }
  func.func @transform_5(%arg0: i32) -> (i32, i32) {
    %c0_i32 = arith.constant 0 : i32
    %c0_i32_0 = arith.constant 0 : i32
    %c0_i32_1 = arith.constant 0 : i32
    return %c0_i32, %c0_i32_0 : i32, i32
  }
  func.func @transform_6(%arg0: i32) -> (i32, i32) {
    %c0_i32 = arith.constant 0 : i32
    %c0_i32_0 = arith.constant 0 : i32
    %c0_i32_1 = arith.constant 0 : i32
    return %c0_i32, %c0_i32_0 : i32, i32
  }
  func.func @transform_7(%arg0: i32) -> (i32, i32) {
    %c0_i32 = arith.constant 0 : i32
    %c0_i32_0 = arith.constant 0 : i32
    return %c0_i32, %arg0 : i32, i32
  }
}

</mosaic_0001>

<bundles_post_ra>
// kernel: tpu_custom_call.1
= control target key start
LH: loop header
LB: loop body
LE: loop exit
PB: predicated region body
PF: predicated region fallthrough
CT: control target
= control target key end

     0   :  { %s1059_s0 = inlined_call_operand.vmem [shape: f32[8,32], index: 0, kind: input, shape index: {}]   ;;  %s1060_s1 = inlined_call_operand.vmem [shape: f32[64,32], index: 1, kind: input, shape index: {}]   ;;  %s1061_s2 = inlined_call_operand.vmem [shape: f32[64,1], index: 2, kind: input, shape index: {}]   ;;  %s1062_s3 = inlined_call_operand.vmem [shape: f32[64,64], index: 3, kind: input, shape index: {}]   ;;  %s1063_s4 = inlined_call_operand.vmem [shape: f32[64,1], index: 4, kind: input, shape index: {}]   ;;  %s1064_s5 = inlined_call_operand.vmem [shape: f32[1,64], index: 5, kind: input, shape index: {}]   ;;  %s1065_s6 = inlined_call_operand.<no memory space> [shape: f32[1,1], index: 6, kind: input, shape index: {}]   ;;  %s1066_s7 = inlined_call_operand.hbm [shape: f32[1,128], index: 7, kind: output, shape index: {}]  }
   0x1   :  { %v12_v0 = vstv %s1065_s6 }
   0x2   :  { %13 = vst [vmem:[#allocation2] sm:$0x1] %v12_v0 }
   0x3   :  { %v44_v1 = vld [vmem:[%s1059_s0 + $0x78] sm:$0xff]  ;;  %vm101_vm0 = vcmask 261120   ;;  %v43_v2 = vld [vmem:[%s1059_s0 + $0x70] sm:$0xff]  ;;  %v813_v3 = vmov 0   ;;  %v42_v4 = vld [vmem:[%s1059_s0 + $0x68] sm:$0xff] }
   0x4   :  { %662 = vmatprep.subr.msk.mxu0 %vm101_vm0, %v44_v1  ;;  %757 = vset.pattern.permute.xlu0 %v813_v3  ;;  %v45_v5 = vld [vmem:[%s1060_s1] sm:$0xff]  ;;  %v60_v7 = vld [vmem:[%s1061_s2 + $0x38] sm:$0xff]  ;;  %v58_v8 = vld [vmem:[%s1061_s2 + $0x28] sm:$0xff] }
   0x5   :  { %663 = vmatpush3.xpose.msk.msra.mxu0 %vm101_vm0, %v44_v1  ;;  %758 = vset.pattern.permute.xlu1 %v813_v3  ;;  %v41_v6 = vld [vmem:[%s1059_s0 + $0x60] sm:$0xff]  ;;  %v59_v9 = vld [vmem:[%s1061_s2 + $0x30] sm:$0xff]  ;;  %v40_v11 = vld [vmem:[%s1059_s0 + $0x58] sm:$0xff] }
   0x6   :  { %664 = vmatprep.subr.msk.mxu0 %vm101_vm0, %v43_v2  ;;  %694 = vmatprep.mubr.msk.f32.mxu0 %vm101_vm0, %v45_v5  ;;  %v57_v10 = vld [vmem:[%s1061_s2 + $0x20] sm:$0xff] }
   0x7   :  { %98 = vperm.xlu0 %757, %v60_v7   ;;  %88 = vperm.xlu1 %758, %v58_v8  }
   0x9   :  { %665 = vmatpush3.xpose.msk.msra.mxu0 %vm101_vm0, %v43_v2 }
   0xa   :  { %666 = vmatprep.subr.msk.mxu0 %vm101_vm0, %v42_v4 }
   0xb   :  { %93 = vperm.xlu0 %757, %v59_v9   ;;  %83 = vperm.xlu1 %758, %v57_v10  }
   0xd   :  { %667 = vmatpush3.xpose.msk.msra.mxu0 %vm101_vm0, %v42_v4 }
   0xe   :  { %668 = vmatprep.subr.msk.mxu0 %vm101_vm0, %v41_v6 }
   0xf   :  { %14 = vsyncpa [#allocation4], 0  ;;  %v56_v12 = vld [vmem:[%s1061_s2 + $0x18] sm:$0xff]  ;;  %v55_v13 = vld [vmem:[%s1061_s2 + $0x10] sm:$0xff]  ;;  %vm343_vm1 = vcmask 523264   ;;  %vm815_vm2 = vmmov 0  }
  0x10   :  { %v39_v14 = vld [vmem:[%s1059_s0 + $0x50] sm:$0xff]  ;;  %78 = vperm.xlu0 %757, %v56_v12   ;;  %73 = vperm.xlu1 %758, %v55_v13   ;;  %v54_v15 = vld [vmem:[%s1061_s2 + $0x8] sm:$0xff]  ;;  %v53_v16 = vld [vmem:[%s1061_s2] sm:$0xff]  ;;  %s816_s20 = smov [#allocation3]  }
  0x11   :  { %669 = vmatpush3.xpose.msk.msra.mxu0 %vm101_vm0, %v41_v6  ;;  %v38_v17 = vld [vmem:[%s1059_s0 + $0x48] sm:$0xff]  ;;  %v302_v18 = vld [vmem:[%s1063_s4 + $0x38] sm:$0xff]  ;;  %v301_v19 = vld [vmem:[%s1063_s4 + $0x30] sm:$0xff]  ;;  %s572_s21 = sshll.u32 %s816_s20, 4  ;;  %s573_s21 = int_to_ptr.vmem [resolvable:$true] %s572_s21 }
  0x12   :  { %670 = vmatprep.subr.msk.mxu0 %vm101_vm0, %v40_v11  ;;  %v37_v20 = vld [vmem:[%s1059_s0 + $0x40] sm:$0xff]  ;;  %v300_v21 = vld [vmem:[%s1063_s4 + $0x28] sm:$0xff]  ;;  %v36_v23 = vld [vmem:[%s1059_s0 + $0x38] sm:$0xff]  ;;  %p796_p1 = scmp.lt.s32.totalorder %s573_s21, %s573_s21 }
  0x13   :  { %v299_v22 = vld [vmem:[%s1063_s4 + $0x20] sm:$0xff]  ;;  %v298_v24 = vld [vmem:[%s1063_s4 + $0x18] sm:$0xff]  ;;  %v297_v25 = vld [vmem:[%s1063_s4 + $0x10] sm:$0xff] }
  0x14   :  { %68 = vperm.xlu0 %757, %v54_v15   ;;  %63 = vperm.xlu1 %758, %v53_v16   ;;  %v35_v26 = vld [vmem:[%s1059_s0 + $0x30] sm:$0xff]  ;;  %v296_v27 = vld [vmem:[%s1063_s4 + $0x8] sm:$0xff]  ;;  %v295_v28 = vld [vmem:[%s1063_s4] sm:$0xff] }
  0x15   :  { %671 = vmatpush3.xpose.msk.msra.mxu0 %vm101_vm0, %v40_v11  ;;  %v34_v29 = vld [vmem:[%s1059_s0 + $0x28] sm:$0xff]  ;;  %v482_v30 = vld [vmem:[#allocation2] sm:$0x1]  ;;  %v32_v32 = vld [vmem:[%s1059_s0 + $0x18] sm:$0xff] }
  0x16   :  { %672 = vmatprep.subr.msk.mxu0 %vm101_vm0, %v39_v14  ;;  %v33_v31 = vld [vmem:[%s1059_s0 + $0x20] sm:$0xff]  ;;  %v31_v33 = vld [vmem:[%s1059_s0 + $0x10] sm:$0xff]  ;;  %v30_v34 = vld [vmem:[%s1059_s0 + $0x8] sm:$0xff] }
  0x17   :  { %v29_v35 = vld [vmem:[%s1059_s0] sm:$0xff]  ;;  %v46_v36 = vld [vmem:[%s1060_s1 + $0x8] sm:$0xff]  ;;  %v47_v37 = vld [vmem:[%s1060_s1 + $0x10] sm:$0xff]  ;;  %s791_s0 = scalar_lea.vmem %s573_s21, 16 }
  0x18   :  { %340 = vperm.xlu0 %757, %v302_v18   ;;  %335 = vperm.xlu1 %758, %v301_v19   ;;  %v48_v38 = vld [vmem:[%s1060_s1 + $0x18] sm:$0xff]  ;;  %v49_v39 = vld [vmem:[%s1060_s1 + $0x20] sm:$0xff]  ;;  %v50_v40 = vld [vmem:[%s1060_s1 + $0x28] sm:$0xff]  ;;  %v814_v19 = vmov 0.0   ;;  %p792_p0 = scmp.ne.s32.totalorder %s573_s21, %s791_s0 }
  0x19   :  { %673 = vmatpush3.xpose.msk.msra.mxu0 %vm101_vm0, %v39_v14  ;;  %v51_v41 = vld [vmem:[%s1060_s1 + $0x30] sm:$0xff]  ;;  %v52_v42 = vld [vmem:[%s1060_s1 + $0x38] sm:$0xff]  ;;  %v287_v43 = vld [vmem:[%s1062_s3] sm:$0xff] }
  0x1a   :  { %674 = vmatprep.subr.msk.mxu0 %vm101_vm0, %v38_v17  ;;  %722 = vmatprep.mubr.msk.f32.mxu1 %vm343_vm1, %v287_v43  ;;  %v288_v12 = vld [vmem:[%s1062_s3 + $0x8] sm:$0xff]  ;;  %v289_v13 = vld [vmem:[%s1062_s3 + $0x10] sm:$0xff]  ;;  %v290_v14 = vld [vmem:[%s1062_s3 + $0x18] sm:$0xff] }
  0x1b   :  { %v291_v15 = vld [vmem:[%s1062_s3 + $0x20] sm:$0xff]  ;;  %v292_v16 = vld [vmem:[%s1062_s3 + $0x28] sm:$0xff]  ;;  %v294_v18 = vld [vmem:[%s1062_s3 + $0x38] sm:$0xff] }
  0x1c   :  { %330 = vperm.xlu0 %757, %v300_v21   ;;  %325 = vperm.xlu1 %758, %v299_v22  }
  0x1d   :  { %675 = vmatpush3.xpose.msk.msra.mxu0 %vm101_vm0, %v38_v17  ;;  %v293_v17 = vld [vmem:[%s1062_s3 + $0x30] sm:$0xff] }
  0x1e   :  { %676 = vmatprep.subr.msk.mxu0 %vm101_vm0, %v37_v20 }
  0x20   :  { %320 = vperm.xlu0 %757, %v298_v24   ;;  %315 = vperm.xlu1 %758, %v297_v25  }
  0x21   :  { %677 = vmatpush3.xpose.msk.msra.mxu0 %vm101_vm0, %v37_v20 }
  0x22   :  { %678 = vmatprep.subr.msk.mxu0 %vm101_vm0, %v36_v23 }
  0x24   :  { %310 = vperm.xlu0 %757, %v296_v27   ;;  %305 = vperm.xlu1 %758, %v295_v28  }
  0x25   :  { %679 = vmatpush3.xpose.msk.msra.mxu0 %vm101_vm0, %v36_v23 }
  0x26   :  { %680 = vmatprep.subr.msk.mxu0 %vm101_vm0, %v35_v26 }
  0x28   :  { %485 = vperm.xlu0 %757, %v482_v30  }
  0x29   :  { %681 = vmatpush3.xpose.msk.msra.mxu0 %vm101_vm0, %v35_v26 }
  0x2a   :  { %682 = vmatprep.subr.msk.mxu0 %vm101_vm0, %v34_v29 }
  0x2d   :  { %683 = vmatpush3.xpose.msk.msra.mxu0 %vm101_vm0, %v34_v29 }
  0x2e   :  { %684 = vmatprep.subr.msk.mxu0 %vm101_vm0, %v33_v31 }
  0x31   :  { %685 = vmatpush3.xpose.msk.msra.mxu0 %vm101_vm0, %v33_v31 }
  0x32   :  { %686 = vmatprep.subr.msk.mxu0 %vm101_vm0, %v32_v32 }
  0x35   :  { %687 = vmatpush3.xpose.msk.msra.mxu0 %vm101_vm0, %v32_v32 }
  0x36   :  { %688 = vmatprep.subr.msk.mxu0 %vm101_vm0, %v31_v33 }
  0x39   :  { %689 = vmatpush3.xpose.msk.msra.mxu0 %vm101_vm0, %v31_v33 }
  0x3a   :  { %690 = vmatprep.subr.msk.mxu0 %vm101_vm0, %v30_v34 }
  0x3d   :  { %691 = vmatpush3.xpose.msk.msra.mxu0 %vm101_vm0, %v30_v34 }
  0x3e   :  { %692 = vmatprep.subr.msk.mxu0 %vm101_vm0, %v29_v35 }
  0x41   :  { %693 = vmatpush3.xpose.msk.msra.mxu0 %vm101_vm0, %v29_v35 }
  0x44   :  { %695 = vmatmul.mubr.msk.f32.vlgmr.msra.gmra.mxu0 %vm101_vm0, %v46_v36 }
  0x45   :  { %697 = vmatprep.mubr.msk.f32.mxu0 %vm101_vm0, %v47_v37 }
  0x48   :  { %698 = vmatmul.mubr.msk.f32.gmra.mxu0 %vm101_vm0, %v48_v38 }
  0x49   :  { %700 = vmatprep.mubr.msk.f32.mxu0 %vm101_vm0, %v49_v39 }
  0x4c   :  { %701 = vmatmul.mubr.msk.f32.gmra.mxu0 %vm101_vm0, %v50_v40 }
  0x4d   :  { %703 = vmatprep.mubr.msk.f32.mxu0 %vm101_vm0, %v51_v41 }
  0x50   :  { %704 = vmatmul.mubr.msk.f32.gmra.mxu0 %vm101_vm0, %v52_v42 }
  0x82   :  { %v99_v46 = vpop.permute.xlu0 %98  ;;  %v89_v48 = vpop.permute.xlu1 %88 }
  0x86   :  { %v94_v51 = vpop.permute.xlu0 %93  ;;  %v84_v53 = vpop.permute.xlu1 %83 }
  0x8b   :  { %v79_v59 = vpop.permute.xlu0 %78  ;;  %v74_v61 = vpop.permute.xlu1 %73 }
  0x8f   :  { %v69_v0 = vpop.permute.xlu0 %68  ;;  %v64_v2 = vpop.permute.xlu1 %63 }
  0x93   :  { %v341_v22 = vpop.permute.xlu0 %340  ;;  %v336_v24 = vpop.permute.xlu1 %335 }
  0x97   :  { %v331_v27 = vpop.permute.xlu0 %330  ;;  %v326_v29 = vpop.permute.xlu1 %325 }
  0x9b   :  { %v321_v35 = vpop.permute.xlu0 %320  ;;  %v316_v37 = vpop.permute.xlu1 %315 }
  0x9f   :  { %v311_v40 = vpop.permute.xlu0 %310  ;;  %v306_v42 = vpop.permute.xlu1 %305 }
 0x104   :  { %v696_v44 = vpop.f32.mrf.mxu0 }
 0x105   :  { %v246_v1 = vadd.f32 %v696_v44, %v69_v0 }
 0x106   :  { %v240_v45 = vpop.f32.mrf.mxu0 }
 0x107   :  { %v241_v3 = vadd.f32 %v240_v45, %v64_v2 }
 0x108   :  { %v699_v47 = vpop.f32.mrf.mxu0 }
 0x109   :  { %v256_v62 = vadd.f32 %v699_v47, %v79_v59 }
 0x10a   :  { %v250_v49 = vpop.f32.mrf.mxu0 }
 0x10b   :  { %v251_v63 = vadd.f32 %v250_v49, %v74_v61 }
 0x10c   :  { %v702_v50 = vpop.f32.mrf.mxu0 }
 0x10d   :  { %v266_v57 = vadd.f32 %v702_v50, %v89_v48 }
 0x10e   :  { %v260_v52 = vpop.f32.mrf.mxu0 }
 0x10f   :  { %v261_v60 = vadd.f32 %v260_v52, %v84_v53  ;;  %v488_v53 = vlaneseq }
 0x110   :  { %v705_v54 = vpop.f32.mrf.mxu0 }
 0x111   :  { %v276_v55 = vadd.f32 %v705_v54, %v99_v46  ;;  %v489_v54 = vshrl.u32 %v488_v53, 7 }
 0x112   :  { %v270_v56 = vpop.f32.mrf.mxu0 }
 0x113   :  { %759 = vtanh.f32 %v276_v55  ;;  %v271_v58 = vadd.f32 %v270_v56, %v94_v51  ;;  %v481_v51 = vld [vmem:[%s1064_s5] sm:$0x1]  ;;  %v490_v55 = vsub.s32 0, %v489_v54  ;;  %v486_v56 = vpop.permute.xlu0 %485  ;;  %s795_s5 = scalar_lea.vmem %s573_s21, 32 }
 0x114   :  { %p797_p2 = scmp.lt.s32.totalorder %s795_s5, %s791_s0 }
 0x115   :  { %761 = vtanh.f32 %v271_v58 }
 0x116   :  { %763 = vtanh.f32 %v266_v57  ;;  %v491_v57 = vrot.slane %v486_v56, %v490_v55  ;;  %p798_p3 = por %p797_p2, %p796_p1 }
 0x117   :  { %765 = vtanh.f32 %v261_v60 }
 0x118   :  { %767 = vtanh.f32 %v256_v62  ;;  %p799_p4 = pnand %p798_p3, %p792_p0 }
 0x119   :  { %769 = vtanh.f32 %v251_v63 }
 0x11a   :  { %771 = vtanh.f32 %v246_v1 }
 0x11b   :  { %773 = vtanh.f32 %v241_v3 }
 0x120   :  { %v760_v4 = vpop.eup %759 }
 0x121   :  { %706 = vmatprep.subr.mxu1 %v760_v4 }
 0x122   :  { %v762_v5 = vpop.eup %761  ;;  %707 = vmatpush3.msra.mxu1 %v760_v4 }
 0x123   :  { %708 = vmatprep.subr.mxu1 %v762_v5  ;;  %v764_v6 = vpop.eup %763 }
 0x124   :  { %709 = vmatpush3.msra.mxu1 %v762_v5  ;;  %v766_v7 = vpop.eup %765 }
 0x125   :  { %710 = vmatprep.subr.mxu1 %v764_v6  ;;  %v768_v8 = vpop.eup %767 }
 0x126   :  { %711 = vmatpush3.msra.mxu1 %v764_v6  ;;  %v770_v9 = vpop.eup %769 }
 0x127   :  { %712 = vmatprep.subr.mxu1 %v766_v7  ;;  %v772_v10 = vpop.eup %771 }
 0x128   :  { %713 = vmatpush3.msra.mxu1 %v766_v7  ;;  %v774_v11 = vpop.eup %773 }
 0x129   :  { %714 = vmatprep.subr.mxu1 %v768_v8 }
 0x12a   :  { %715 = vmatpush3.msra.mxu1 %v768_v8 }
 0x12b   :  { %716 = vmatprep.subr.mxu1 %v770_v9 }
 0x12c   :  { %717 = vmatpush3.msra.mxu1 %v770_v9 }
 0x12d   :  { %718 = vmatprep.subr.mxu1 %v772_v10 }
 0x12e   :  { %719 = vmatpush3.msra.mxu1 %v772_v10 }
 0x12f   :  { %720 = vmatprep.subr.mxu1 %v774_v11 }
 0x130   :  { %721 = vmatpush3.msra.mxu1 %v774_v11 }
 0x131   :  { %723 = vmatmul.mubr.msk.f32.vlgmr.msra.gmra.mxu1 %vm343_vm1, %v288_v12  ;;  %734 = vmatprep.subr.mxu1 %v814_v19 }
 0x132   :  { %725 = vmatprep.mubr.msk.f32.mxu1 %vm343_vm1, %v289_v13 }
 0x135   :  { %726 = vmatmul.mubr.msk.f32.gmra.mxu1 %vm343_vm1, %v290_v14 }
 0x136   :  { %728 = vmatprep.mubr.msk.f32.mxu1 %vm343_vm1, %v291_v15 }
 0x139   :  { %729 = vmatmul.mubr.msk.f32.gmra.mxu1 %vm343_vm1, %v292_v16 }
 0x13a   :  { %731 = vmatprep.mubr.msk.f32.mxu1 %vm343_vm1, %v293_v17 }
 0x13d   :  { %732 = vmatmul.mubr.msk.f32.gmra.mxu1 %vm343_vm1, %v294_v18 }
 0x13e   :  { %750 = vmatprep.mubr.msk.f32.mxu1 %vm815_vm2, %v814_v19 }
 0x1f1   :  { %v724_v20 = vpop.f32.mrf.mxu1 }
 0x1f2   :  { %v440_v41 = vadd.f32 %v724_v20, %v311_v40 }
 0x1f3   :  { %v434_v21 = vpop.f32.mrf.mxu1 }
 0x1f4   :  { %v435_v43 = vadd.f32 %v434_v21, %v306_v42 }
 0x1f5   :  { %v727_v23 = vpop.f32.mrf.mxu1 }
 0x1f6   :  { %v450_v38 = vadd.f32 %v727_v23, %v321_v35 }
 0x1f7   :  { %v444_v25 = vpop.f32.mrf.mxu1 }
 0x1f8   :  { %v445_v39 = vadd.f32 %v444_v25, %v316_v37 }
 0x1f9   :  { %v730_v26 = vpop.f32.mrf.mxu1 }
 0x1fa   :  { %v460_v33 = vadd.f32 %v730_v26, %v331_v27 }
 0x1fb   :  { %v454_v28 = vpop.f32.mrf.mxu1 }
 0x1fc   :  { %v455_v36 = vadd.f32 %v454_v28, %v326_v29 }
 0x1fd   :  { %v733_v30 = vpop.f32.mrf.mxu1 }
 0x1fe   :  { %v470_v31 = vadd.f32 %v733_v30, %v341_v22 }
 0x1ff   :  { %v464_v32 = vpop.f32.mrf.mxu1 }
 0x200   :  { %775 = vtanh.f32 %v470_v31  ;;  %v465_v34 = vadd.f32 %v464_v32, %v336_v24 }
 0x202   :  { %777 = vtanh.f32 %v465_v34 }
 0x203   :  { %779 = vtanh.f32 %v460_v33 }
 0x204   :  { %781 = vtanh.f32 %v455_v36 }
 0x205   :  { %783 = vtanh.f32 %v450_v38 }
 0x206   :  { %785 = vtanh.f32 %v445_v39 }
 0x207   :  { %787 = vtanh.f32 %v440_v41 }
 0x208   :  { %789 = vtanh.f32 %v435_v43 }
 0x20d   :  { %v776_v44 = vpop.eup %775 }
 0x20e   :  { %735 = vmatpush3.msra.mxu1 %v776_v44 }
 0x20f   :  { %v778_v45 = vpop.eup %777  ;;  %736 = vmatprep.subr.mxu1 %v814_v19 }
 0x210   :  { %737 = vmatpush3.msra.mxu1 %v778_v45  ;;  %v780_v46 = vpop.eup %779 }
 0x211   :  { %738 = vmatprep.subr.mxu1 %v814_v19  ;;  %v782_v47 = vpop.eup %781 }
 0x212   :  { %739 = vmatpush3.msra.mxu1 %v780_v46  ;;  %v784_v48 = vpop.eup %783 }
 0x213   :  { %740 = vmatprep.subr.mxu1 %v814_v19  ;;  %v786_v49 = vpop.eup %785 }
 0x214   :  { %741 = vmatpush3.msra.mxu1 %v782_v47  ;;  %v788_v50 = vpop.eup %787 }
 0x215   :  { %742 = vmatprep.subr.mxu1 %v814_v19  ;;  %v790_v52 = vpop.eup %789 }
 0x216   :  { %743 = vmatpush3.msra.mxu1 %v784_v48 }
 0x217   :  { %744 = vmatprep.subr.mxu1 %v814_v19 }
 0x218   :  { %745 = vmatpush3.msra.mxu1 %v786_v49 }
 0x219   :  { %746 = vmatprep.subr.mxu1 %v814_v19 }
 0x21a   :  { %747 = vmatpush3.msra.mxu1 %v788_v50 }
 0x21b   :  { %748 = vmatprep.subr.mxu1 %v814_v19 }
 0x21c   :  { %749 = vmatpush3.msra.mxu1 %v790_v52 }
 0x21d   :  { %751 = vmatmul.mubr.msk.f32.vlgmr.msra.gmra.mxu1 %vm343_vm1, %v481_v51 }
 0x2dd   :  { %v561_v58 = vpop.f32.mrf.mxu1 }
 0x2de   :  { %v562_v59 = vadd.f32 %v561_v58, %v491_v57 }
 0x2df   :  { %v752_v60 = vpop.f32.mrf.mxu1 }
 0x2e0   :  { %565 = vst [vmem:[#allocation3] sm:$0x1] %v562_v59 }
 0x2e1   :  { %802 = shalt.err (!%p799_p4)
}
 0x2e2   :  { %575 = dma.vmem_to_hbm [thread:$0]  %s573_s21, 16, %s1066_s7, [#allocation4]  }
 0x2e3   :  { %811 = dma.done.wait [#allocation4], 16  }
 0x2e4   :  { %812 = vsyncadd [#allocation4], 4294967280 }
 0x2e5   :  { %579 = vsyncpa [#allocation4], 1 }

</bundles_post_ra>
